<compile_context>
chip_gen: v5e
topology: v5e:2x2
jax: 0.10.0
libtpu: 0.0.40
codegen_flags: <defaults>
</compile_context>

<pallas_src>
import functools

import jax
import jax.numpy as jnp
from jax.experimental import pallas as pl
from jax.experimental.pallas import tpu as pltpu


def _round_up(x, m):
    return (x + m - 1) // m * m


def mlp_kernel(x_ref, w1_ref, w2_ref, w3_ref, w4_ref, b_ref, o_ref,
               *, h1, h2, h3):
    # Biases live in one concatenated (1, h1+h2+h3+act_p) buffer; all slice
    # offsets are static multiples of 128, so these are lane-aligned views.
    b1 = b_ref[:, :h1]
    b2 = b_ref[:, h1:h1 + h2]
    b3 = b_ref[:, h1 + h2:h1 + h2 + h3]
    b4 = b_ref[:, h1 + h2 + h3:]

    # layer1 + ReLU
    h = jnp.dot(x_ref[...], w1_ref[...], preferred_element_type=jnp.float32)
    h = jnp.maximum(h + b1, 0.0)
    # layer2 + ReLU
    h = jnp.dot(h, w2_ref[...], preferred_element_type=jnp.float32)
    h = jnp.maximum(h + b2, 0.0)
    # layer3 + ReLU
    h = jnp.dot(h, w3_ref[...], preferred_element_type=jnp.float32)
    h = jnp.maximum(h + b3, 0.0)
    # layer4 (no activation)
    h = jnp.dot(h, w4_ref[...], preferred_element_type=jnp.float32)
    o_ref[...] = (h + b4).astype(o_ref.dtype)


def prepare_params(params, nb_actions):
    """One-time (out-of-hot-path) packing:
       - pad the last layer's output dim to a multiple of 128 lanes
       - concatenate all biases into a single (1, H1+H2+H3+act_p) buffer.
    Returns (w1, w2, w3, w4_padded, bias_cat)."""
    (w1, b1), (w2, b2), (w3, b3), (w4, b4) = params
    act_p = _round_up(nb_actions, 128)
    h3 = w4.shape[0]
    w4p = jnp.zeros((h3, act_p), jnp.float32).at[:, :nb_actions].set(w4)
    b4p = jnp.zeros((act_p,), jnp.float32).at[:nb_actions].set(b4)
    bcat = jnp.concatenate([b1, b2, b3, b4p])[None, :]
    return (w1, w2, w3, w4p, bcat)


@functools.partial(jax.jit, static_argnames=("nb_actions",))
def policy_network_forward(x, prepared, nb_actions):
    """x: (B, nb_observations) float32. `prepared` = prepare_params(...).
    Returns (B, nb_actions) float32."""
    w1, w2, w3, w4p, bcat = prepared
    B, nobs = x.shape
    h1 = w1.shape[1]
    h2 = w2.shape[1]
    h3 = w3.shape[1]
    act_p = w4p.shape[1]

    # Batch tiling: tiny batches run as a single full block (grid=(1,)); large
    # batches are split into 128-row tiles on a parallel grid axis (lets v7x
    # use both TensorCores; harmless on v5e/v6e).
    TB = min(_round_up(B, 8), 128)
    Bp = _round_up(B, TB)
    xp = x if Bp == B else jnp.zeros((Bp, nobs), x.dtype).at[:B, :].set(x)

    kernel = functools.partial(mlp_kernel, h1=h1, h2=h2, h3=h3)

    out = pl.pallas_call(
        kernel,
        out_shape=jax.ShapeDtypeStruct((Bp, act_p), jnp.float32),
        grid=(Bp // TB,),
        in_specs=[
            pl.BlockSpec((TB, nobs), lambda i: (i, 0)),              # x tile
            pl.BlockSpec((nobs, h1), lambda i: (0, 0)),              # w1 (unpadded obs dim)
            pl.BlockSpec((h1, h2), lambda i: (0, 0)),                # w2
            pl.BlockSpec((h2, h3), lambda i: (0, 0)),                # w3
            pl.BlockSpec((h3, act_p), lambda i: (0, 0)),             # w4 (lane-padded)
            pl.BlockSpec((1, h1 + h2 + h3 + act_p), lambda i: (0, 0)),  # all biases
        ],
        out_specs=pl.BlockSpec((TB, act_p), lambda i: (i, 0)),
        compiler_params=pltpu.CompilerParams(
            dimension_semantics=("parallel",),
            vmem_limit_bytes=8 << 20,
        ),
    )(xp, w1, w2, w3, w4p, bcat)

    # Keep the kernel output lane-dense (act_p=128); slice to the real action
    # count outside the kernel.
    return out[:B, :nb_actions]


def init_params(key, nb_observations, nb_actions):
    """PyTorch nn.Linear default init: U(-1/sqrt(fan_in), 1/sqrt(fan_in)).
    Weights returned as (in, out) for the y = x @ W + b convention."""
    dims = [(nb_observations, 256), (256, 256), (256, 128), (128, nb_actions)]
    params = []
    for (fan_in, fan_out) in dims:
        key, kw, kb = jax.random.split(key, 3)
        bound = 1.0 / jnp.sqrt(jnp.float32(fan_in))
        w = jax.random.uniform(kw, (fan_in, fan_out), jnp.float32, -bound, bound)
        b = jax.random.uniform(kb, (fan_out,), jnp.float32, -bound, bound)
        params.append((w, b))
    return tuple(params)


def reference_forward(x, params):
    (w1, b1), (w2, b2), (w3, b3), (w4, b4) = params
    h = jax.nn.relu(x @ w1 + b1)
    h = jax.nn.relu(h @ w2 + b2)
    h = jax.nn.relu(h @ w3 + b3)
    return h @ w4 + b4


if __name__ == "__main__":
    nb_observations = 8   # LunarLander-v2 observation dim
    nb_actions = 4        # LunarLander-v2 action dim
    batch = 2

    key = jax.random.PRNGKey(0)
    key, kx = jax.random.split(key)
    x = jax.random.normal(kx, (batch, nb_observations), jnp.float32)
    params = init_params(key, nb_observations, nb_actions)

    # One-time packing, outside the per-step hot path.
    prepared = prepare_params(params, nb_actions)
    prepared = jax.tree_util.tree_map(jax.block_until_ready, prepared)

    out = policy_network_forward(x, prepared, nb_actions)
    out = jax.block_until_ready(out)

    ref = reference_forward(x, params)
    assert out.shape == (batch, nb_actions)
    assert jnp.allclose(out, ref, atol=1e-5, rtol=1e-5), "mismatch vs reference"

    print("KERNEL_OK")
</pallas_src>

<mosaic_0001>
module attributes {stable_mosaic.version = 11 : i64} {
  func.func @mlp_kernel(%arg0: i32, %arg1: memref<8x8xf32, #tpu.memory_space<vmem>>, %arg2: memref<8x256xf32, #tpu.memory_space<vmem>>, %arg3: memref<256x256xf32, #tpu.memory_space<vmem>>, %arg4: memref<256x128xf32, #tpu.memory_space<vmem>>, %arg5: memref<128x128xf32, #tpu.memory_space<vmem>>, %arg6: memref<1x768xf32, #tpu.memory_space<vmem>>, %arg7: memref<8x128xf32, #tpu.memory_space<vmem>>) attributes {dimension_semantics = [#tpu.dimension_semantics<parallel>], iteration_bounds = array<i64: 1>, scalar_prefetch = 0 : i64, scratch_operands = 0 : i64, tpu.core_type = #tpu.core_type<tc>, window_params = [{transform_indices = @transform_0, window_bounds = array<i64: 8, 8>}, {pipeline_mode = #tpu.pipeline_mode<synchronous>, transform_indices = @transform_1, window_bounds = array<i64: 8, 256>}, {pipeline_mode = #tpu.pipeline_mode<synchronous>, transform_indices = @transform_2, window_bounds = array<i64: 256, 256>}, {pipeline_mode = #tpu.pipeline_mode<synchronous>, transform_indices = @transform_3, window_bounds = array<i64: 256, 128>}, {pipeline_mode = #tpu.pipeline_mode<synchronous>, transform_indices = @transform_4, window_bounds = array<i64: 128, 128>}, {pipeline_mode = #tpu.pipeline_mode<synchronous>, transform_indices = @transform_5, window_bounds = array<i64: 1, 768>}, {transform_indices = @transform_6, window_bounds = array<i64: 8, 128>}]} {
    %c0 = arith.constant 0 : index
    %c0_0 = arith.constant 0 : index
    %0 = vector.load %arg6[%c0, %c0_0] : memref<1x768xf32, #tpu.memory_space<vmem>>, vector<1x256xf32>
    %c0_1 = arith.constant 0 : index
    %c256 = arith.constant 256 : index
    %1 = vector.load %arg6[%c0_1, %c256] : memref<1x768xf32, #tpu.memory_space<vmem>>, vector<1x256xf32>
    %c0_2 = arith.constant 0 : index
    %c512 = arith.constant 512 : index
    %2 = vector.load %arg6[%c0_2, %c512] : memref<1x768xf32, #tpu.memory_space<vmem>>, vector<1x128xf32>
    %c0_3 = arith.constant 0 : index
    %c640 = arith.constant 640 : index
    %3 = vector.load %arg6[%c0_3, %c640] : memref<1x768xf32, #tpu.memory_space<vmem>>, vector<1x128xf32>
    %c0_4 = arith.constant 0 : index
    %c0_5 = arith.constant 0 : index
    %4 = vector.load %arg1[%c0_4, %c0_5] : memref<8x8xf32, #tpu.memory_space<vmem>>, vector<8x8xf32>
    %c0_6 = arith.constant 0 : index
    %c0_7 = arith.constant 0 : index
    %5 = vector.load %arg2[%c0_6, %c0_7] : memref<8x256xf32, #tpu.memory_space<vmem>>, vector<8x256xf32>
    %cst = arith.constant dense<0.000000e+00> : vector<8x256xf32>
    %6 = tpu.matmul %4, %5, %cst {dimension_numbers = #tpu.dot_dimension_numbers<[1], [0], [0], [1], [0, 0, 1, 1], [], []>} : vector<8x8xf32>, vector<8x256xf32>, vector<8x256xf32> -> vector<8x256xf32>
    %7 = vector.broadcast %0 : vector<1x256xf32> to vector<8x256xf32>
    %8 = arith.addf %6, %7 : vector<8x256xf32>
    %cst_8 = arith.constant 0.000000e+00 : f32
    %9 = vector.broadcast %cst_8 : f32 to vector<8x256xf32>
    %10 = arith.maximumf %8, %9 : vector<8x256xf32>
    %c0_9 = arith.constant 0 : index
    %c0_10 = arith.constant 0 : index
    %11 = vector.load %arg3[%c0_9, %c0_10] : memref<256x256xf32, #tpu.memory_space<vmem>>, vector<256x256xf32>
    %cst_11 = arith.constant dense<0.000000e+00> : vector<8x256xf32>
    %12 = tpu.matmul %10, %11, %cst_11 {dimension_numbers = #tpu.dot_dimension_numbers<[1], [0], [0], [1], [0, 0, 1, 1], [], []>} : vector<8x256xf32>, vector<256x256xf32>, vector<8x256xf32> -> vector<8x256xf32>
    %13 = vector.broadcast %1 : vector<1x256xf32> to vector<8x256xf32>
    %14 = arith.addf %12, %13 : vector<8x256xf32>
    %cst_12 = arith.constant 0.000000e+00 : f32
    %15 = vector.broadcast %cst_12 : f32 to vector<8x256xf32>
    %16 = arith.maximumf %14, %15 : vector<8x256xf32>
    %c0_13 = arith.constant 0 : index
    %c0_14 = arith.constant 0 : index
    %17 = vector.load %arg4[%c0_13, %c0_14] : memref<256x128xf32, #tpu.memory_space<vmem>>, vector<256x128xf32>
    %cst_15 = arith.constant dense<0.000000e+00> : vector<8x128xf32>
    %18 = tpu.matmul %16, %17, %cst_15 {dimension_numbers = #tpu.dot_dimension_numbers<[1], [0], [0], [1], [0, 0, 1, 1], [], []>} : vector<8x256xf32>, vector<256x128xf32>, vector<8x128xf32> -> vector<8x128xf32>
    %19 = vector.broadcast %2 : vector<1x128xf32> to vector<8x128xf32>
    %20 = arith.addf %18, %19 : vector<8x128xf32>
    %cst_16 = arith.constant 0.000000e+00 : f32
    %21 = vector.broadcast %cst_16 : f32 to vector<8x128xf32>
    %22 = arith.maximumf %20, %21 : vector<8x128xf32>
    %c0_17 = arith.constant 0 : index
    %c0_18 = arith.constant 0 : index
    %23 = vector.load %arg5[%c0_17, %c0_18] : memref<128x128xf32, #tpu.memory_space<vmem>>, vector<128x128xf32>
    %cst_19 = arith.constant dense<0.000000e+00> : vector<8x128xf32>
    %24 = tpu.matmul %22, %23, %cst_19 {dimension_numbers = #tpu.dot_dimension_numbers<[1], [0], [0], [1], [0, 0, 1, 1], [], []>} : vector<8x128xf32>, vector<128x128xf32>, vector<8x128xf32> -> vector<8x128xf32>
    %25 = vector.broadcast %3 : vector<1x128xf32> to vector<8x128xf32>
    %26 = arith.addf %24, %25 : vector<8x128xf32>
    %c0_20 = arith.constant 0 : index
    %c0_21 = arith.constant 0 : index
    %27 = vector.load %arg7[%c0_20, %c0_21] : memref<8x128xf32, #tpu.memory_space<vmem>>, vector<8x128xf32>
    tpu.vector_store %arg7[%c0_20, %c0_21], %26 {strides = array<i32>} : memref<8x128xf32, #tpu.memory_space<vmem>>, vector<8x128xf32>,
    return
  }
  func.func @transform_0(%arg0: i32) -> (i32, i32) {
    %c0_i32 = arith.constant 0 : i32
    %c0_i32_0 = arith.constant 0 : i32
    return %arg0, %c0_i32 : i32, i32
  }
  func.func @transform_1(%arg0: i32) -> (i32, i32) {
    %c0_i32 = arith.constant 0 : i32
    %c0_i32_0 = arith.constant 0 : i32
    %c0_i32_1 = arith.constant 0 : i32
    return %c0_i32, %c0_i32_0 : i32, i32
  }
  func.func @transform_2(%arg0: i32) -> (i32, i32) {
    %c0_i32 = arith.constant 0 : i32
    %c0_i32_0 = arith.constant 0 : i32
    %c0_i32_1 = arith.constant 0 : i32
    return %c0_i32, %c0_i32_0 : i32, i32
  }
  func.func @transform_3(%arg0: i32) -> (i32, i32) {
    %c0_i32 = arith.constant 0 : i32
    %c0_i32_0 = arith.constant 0 : i32
    %c0_i32_1 = arith.constant 0 : i32
    return %c0_i32, %c0_i32_0 : i32, i32
  }
  func.func @transform_4(%arg0: i32) -> (i32, i32) {
    %c0_i32 = arith.constant 0 : i32
    %c0_i32_0 = arith.constant 0 : i32
    %c0_i32_1 = arith.constant 0 : i32
    return %c0_i32, %c0_i32_0 : i32, i32
  }
  func.func @transform_5(%arg0: i32) -> (i32, i32) {
    %c0_i32 = arith.constant 0 : i32
    %c0_i32_0 = arith.constant 0 : i32
    %c0_i32_1 = arith.constant 0 : i32
    return %c0_i32, %c0_i32_0 : i32, i32
  }
  func.func @transform_6(%arg0: i32) -> (i32, i32) {
    %c0_i32 = arith.constant 0 : i32
    %c0_i32_0 = arith.constant 0 : i32
    return %arg0, %c0_i32 : i32, i32
  }
}

</mosaic_0001>

<bundles_post_ra>
// kernel: policy_network_forward.1
= control target key start
LH: loop header
LB: loop body
LE: loop exit
PB: predicated region body
PF: predicated region fallthrough
CT: control target
= control target key end

     0   :  { %11 = vsyncpa [#allocation3], 0  ;;  %s605_s0 = inlined_call_operand.vmem [shape: f32[8,8], index: 0, kind: input, shape index: {}]   ;;  %s606_s1 = inlined_call_operand.hbm [shape: f32[8,256], index: 1, kind: input, shape index: {}]   ;;  %s607_s2 = inlined_call_operand.hbm [shape: f32[256,256], index: 2, kind: input, shape index: {}]   ;;  %s608_s3 = inlined_call_operand.hbm [shape: f32[256,128], index: 3, kind: input, shape index: {}]   ;;  %s609_s4 = inlined_call_operand.hbm [shape: f32[128,128], index: 4, kind: input, shape index: {}]   ;;  %s610_s5 = inlined_call_operand.vmem [shape: f32[1,768], index: 5, kind: input, shape index: {}]   ;;  %s611_s6 = inlined_call_operand.vmem [shape: f32[8,128], index: 6, kind: output, shape index: {}]  }
   0x1   :  { %12 = vsyncpa [#allocation5], 0  ;;  %s31_s23 = sshll.u32 %s607_s2, 4  ;;  %s32_s23 = int_to_ptr.hbm [resolvable:$true] %s31_s23 }
   0x2   :  { %13 = vsyncpa [#allocation8], 0  ;;  %s530_s24 = smov [#allocation4]   ;;  %s21_s28 = sshll.u32 %s606_s1, 4  ;;  %s22_s28 = int_to_ptr.hbm [resolvable:$true] %s21_s28 }
   0x3   :  { %s33_s25 = sshll.u32 %s530_s24, 4  ;;  %s531_s29 = smov 256   ;;  %s34_s25 = int_to_ptr.vmem [resolvable:$true] %s33_s25 }
   0x4   :  { %s532_s30 = smov 16   ;;  %s533_s7 = smov [#allocation2]  }
   0x5   :  { %39 = dma.hbm_to_vmem [thread:$0]  %s32_s23, 8192, %s34_s25, [#allocation5], %s531_s29, %s531_s29, %s532_s30  }
   0x6   :  { %s23_s8 = sshll.u32 %s533_s7, 4  ;;  %s44_s11 = sshll.u32 %s608_s3, 4  ;;  %s24_s8 = int_to_ptr.vmem [resolvable:$true] %s23_s8  ;;  %s45_s11 = int_to_ptr.hbm [resolvable:$true] %s44_s11 }
   0x7   :  { %26 = dma.hbm_to_vmem [thread:$0]  %s22_s28, 256, %s24_s8, [#allocation3]  }
   0x8   :  { %s534_s2 = smov [#allocation6]   ;;  %s57_s1 = sshll.u32 %s609_s4, 4  ;;  %s58_s1 = int_to_ptr.hbm [resolvable:$true] %s57_s1 }
   0x9   :  { %s46_s12 = sshll.u32 %s534_s2, 4  ;;  %s535_s15 = smov 128   ;;  %s47_s12 = int_to_ptr.vmem [resolvable:$true] %s46_s12 }
   0xa   :  { %s536_s16 = smov 8   ;;  %s537_s17 = smov [#allocation7]  }
   0xb   :  { %52 = dma.hbm_to_vmem [thread:$0]  %s45_s11, 4096, %s47_s12, [#allocation5], %s535_s15, %s535_s15, %s536_s16  }
   0xc   :  { %s59_s18 = sshll.u32 %s537_s17, 4  ;;  %s60_s18 = int_to_ptr.vmem [resolvable:$true] %s59_s18 }
   0xd   :  { %65 = dma.hbm_to_vmem [thread:$0]  %s58_s1, 2048, %s60_s18, [#allocation8], %s535_s15, %s535_s15, %s536_s16  }
   0xe   :  { %524 = dma.done.wait [#allocation3], 256  }
   0xf   :  { %525 = vsyncadd [#allocation3], 4294967040 }
  0x10   :  { %526 = dma.done.wait [#allocation5], 12288  }
  0x11   :  { %527 = vsyncadd [#allocation5], 4294955008 }
  0x12   :  { %528 = dma.done.wait [#allocation8], 2048  }
  0x13   :  { %529 = vsyncadd [#allocation8], 4294965248  ;;  %vm96_vm0 = vcmask 64512   ;;  %v89_v0 = vld [vmem:[#allocation2] sm:$0xff]  ;;  %v90_v2 = vld [vmem:[#allocation2 + $0x8] sm:$0xff] }
  0x14   :  { %v88_v1 = vld [vmem:[%s605_s0] sm:$0xff]  ;;  %115 = vmatpush.msra.mxu1 %v89_v0  ;;  %v173_v4 = vld [vmem:[#allocation4 + $0xf8] sm:$0xff]  ;;  %v170_v5 = vld [vmem:[#allocation4 + $0xe0] sm:$0xff] }
  0x15   :  { %v172_v3 = vld [vmem:[#allocation4 + $0xf0] sm:$0xff]  ;;  %416 = vmatmul.msk.f32.vlgmr.msra.gmra.mxu1 %vm96_vm0, %v88_v1  ;;  %v171_v6 = vld [vmem:[#allocation4 + $0xe8] sm:$0xff]  ;;  %251 = vmatpush.msra.mxu0 %v173_v4  ;;  %v169_v8 = vld [vmem:[#allocation4 + $0xd8] sm:$0xff] }
  0x16   :  { %211 = vmatpush.msra.mxu2 %v172_v3  ;;  %135 = vmatpush.msrb.mxu1 %v90_v2  ;;  %v168_v7 = vld [vmem:[#allocation4 + $0xd0] sm:$0xff]  ;;  %v205_v10 = vld [vmem:[#allocation4 + $0x1f8] sm:$0xff]  ;;  %v166_v11 = vld [vmem:[#allocation4 + $0xc0] sm:$0xff] }
  0x17   :  { %v204_v9 = vld [vmem:[#allocation4 + $0x1f0] sm:$0xff]  ;;  %252 = vmatpush.msra.mxu0 %v171_v6  ;;  %v202_v12 = vld [vmem:[#allocation4 + $0x1e0] sm:$0xff]  ;;  %v167_v13 = vld [vmem:[#allocation4 + $0xc8] sm:$0xff] }
  0x18   :  { %212 = vmatpush.msra.mxu2 %v170_v5  ;;  %231 = vmatpush.msra.mxu3 %v204_v9  ;;  %v203_v14 = vld [vmem:[#allocation4 + $0x1e8] sm:$0xff]  ;;  %v200_v15 = vld [vmem:[#allocation4 + $0x1d0] sm:$0xff]  ;;  %v165_v17 = vld [vmem:[#allocation4 + $0xb8] sm:$0xff] }
  0x19   :  { %271 = vmatpush.msra.mxu1 %v205_v10  ;;  %253 = vmatpush.msra.mxu0 %v169_v8  ;;  %v164_v16 = vld [vmem:[#allocation4 + $0xb0] sm:$0xff]  ;;  %v201_v18 = vld [vmem:[#allocation4 + $0x1d8] sm:$0xff]  ;;  %v162_v19 = vld [vmem:[#allocation4 + $0xa0] sm:$0xff] }
  0x1a   :  { %213 = vmatpush.msra.mxu2 %v168_v7  ;;  %232 = vmatpush.msra.mxu3 %v202_v12  ;;  %v198_v20 = vld [vmem:[#allocation4 + $0x1c0] sm:$0xff]  ;;  %v163_v21 = vld [vmem:[#allocation4 + $0xa8] sm:$0xff]  ;;  %v160_v23 = vld [vmem:[#allocation4 + $0x90] sm:$0xff] }
  0x1b   :  { %272 = vmatpush.msra.mxu1 %v203_v14  ;;  %254 = vmatpush.msra.mxu0 %v167_v13  ;;  %v199_v22 = vld [vmem:[#allocation4 + $0x1c8] sm:$0xff]  ;;  %v196_v24 = vld [vmem:[#allocation4 + $0x1b0] sm:$0xff]  ;;  %v161_v25 = vld [vmem:[#allocation4 + $0x98] sm:$0xff] }
  0x1c   :  { %214 = vmatpush.msra.mxu2 %v166_v11  ;;  %233 = vmatpush.msra.mxu3 %v200_v15  ;;  %v197_v26 = vld [vmem:[#allocation4 + $0x1b8] sm:$0xff]  ;;  %v158_v27 = vld [vmem:[#allocation4 + $0x80] sm:$0xff]  ;;  %v159_v29 = vld [vmem:[#allocation4 + $0x88] sm:$0xff] }
  0x1d   :  { %417 = vmatmul.msk.f32.vlgmr.msrb.gmra.mxu1 %vm96_vm0, %v88_v1  ;;  %255 = vmatpush.msra.mxu0 %v165_v17  ;;  %v194_v28 = vld [vmem:[#allocation4 + $0x1a0] sm:$0xff]  ;;  %v195_v30 = vld [vmem:[#allocation4 + $0x1a8] sm:$0xff]  ;;  %v156_v31 = vld [vmem:[#allocation4 + $0x70] sm:$0xff] }
  0x1e   :  { %215 = vmatpush.msra.mxu2 %v164_v16  ;;  %273 = vmatpush.msra.mxu1 %v201_v18  ;;  %v157_v32 = vld [vmem:[#allocation4 + $0x78] sm:$0xff]  ;;  %v192_v33 = vld [vmem:[#allocation4 + $0x190] sm:$0xff]  ;;  %v154_v35 = vld [vmem:[#allocation4 + $0x60] sm:$0xff] }
  0x1f   :  { %234 = vmatpush.msra.mxu3 %v198_v20  ;;  %256 = vmatpush.msra.mxu0 %v163_v21  ;;  %v193_v34 = vld [vmem:[#allocation4 + $0x198] sm:$0xff]  ;;  %v190_v36 = vld [vmem:[#allocation4 + $0x180] sm:$0xff]  ;;  %v155_v37 = vld [vmem:[#allocation4 + $0x68] sm:$0xff] }
  0x20   :  { %216 = vmatpush.msra.mxu2 %v162_v19  ;;  %274 = vmatpush.msra.mxu1 %v199_v22  ;;  %v191_v38 = vld [vmem:[#allocation4 + $0x188] sm:$0xff]  ;;  %v152_v39 = vld [vmem:[#allocation4 + $0x50] sm:$0xff]  ;;  %v153_v41 = vld [vmem:[#allocation4 + $0x58] sm:$0xff] }
  0x21   :  { %235 = vmatpush.msra.mxu3 %v196_v24  ;;  %257 = vmatpush.msra.mxu0 %v161_v25  ;;  %v188_v40 = vld [vmem:[#allocation4 + $0x170] sm:$0xff]  ;;  %v189_v42 = vld [vmem:[#allocation4 + $0x178] sm:$0xff]  ;;  %v150_v43 = vld [vmem:[#allocation4 + $0x40] sm:$0xff] }
  0x22   :  { %217 = vmatpush.msra.mxu2 %v160_v23  ;;  %275 = vmatpush.msra.mxu1 %v197_v26  ;;  %v151_v44 = vld [vmem:[#allocation4 + $0x48] sm:$0xff]  ;;  %v148_v45 = vld [vmem:[#allocation4 + $0x30] sm:$0xff]  ;;  %v149_v46 = vld [vmem:[#allocation4 + $0x38] sm:$0xff] }
  0x23   :  { %236 = vmatpush.msra.mxu3 %v194_v28  ;;  %258 = vmatpush.msra.mxu0 %v159_v29  ;;  %v146_v47 = vld [vmem:[#allocation4 + $0x20] sm:$0xff]  ;;  %v147_v49 = vld [vmem:[#allocation4 + $0x28] sm:$0xff]  ;;  %v144_v51 = vld [vmem:[#allocation4 + $0x10] sm:$0xff] }
  0x24   :  { %218 = vmatpush.msra.mxu2 %v158_v27  ;;  %276 = vmatpush.msra.mxu1 %v195_v30  ;;  %v186_v48 = vld [vmem:[#allocation4 + $0x160] sm:$0xff]  ;;  %v187_v50 = vld [vmem:[#allocation4 + $0x168] sm:$0xff]  ;;  %v184_v52 = vld [vmem:[#allocation4 + $0x150] sm:$0xff] }
  0x25   :  { %237 = vmatpush.msra.mxu3 %v192_v33  ;;  %259 = vmatpush.msra.mxu0 %v157_v32  ;;  %v145_v53 = vld [vmem:[#allocation4 + $0x18] sm:$0xff]  ;;  %v142_v55 = vld [vmem:[#allocation4] sm:$0xff]  ;;  %v143_v57 = vld [vmem:[#allocation4 + $0x8] sm:$0xff] }
  0x26   :  { %219 = vmatpush.msra.mxu2 %v156_v31  ;;  %277 = vmatpush.msra.mxu1 %v193_v34  ;;  %v185_v54 = vld [vmem:[#allocation4 + $0x158] sm:$0xff]  ;;  %v182_v56 = vld [vmem:[#allocation4 + $0x140] sm:$0xff]  ;;  %v183_v58 = vld [vmem:[#allocation4 + $0x148] sm:$0xff] }
  0x27   :  { %238 = vmatpush.msra.mxu3 %v190_v36  ;;  %260 = vmatpush.msra.mxu0 %v155_v37  ;;  %v180_v59 = vld [vmem:[#allocation4 + $0x130] sm:$0xff]  ;;  %v181_v60 = vld [vmem:[#allocation4 + $0x138] sm:$0xff]  ;;  %v178_v61 = vld [vmem:[#allocation4 + $0x120] sm:$0xff] }
  0x28   :  { %220 = vmatpush.msra.mxu2 %v154_v35  ;;  %278 = vmatpush.msra.mxu1 %v191_v38  ;;  %v179_v62 = vld [vmem:[#allocation4 + $0x128] sm:$0xff]  ;;  %v176_v63 = vld [vmem:[#allocation4 + $0x110] sm:$0xff]  ;;  %v177_v0 = vld [vmem:[#allocation4 + $0x118] sm:$0xff] }
  0x29   :  { %239 = vmatpush.msra.mxu3 %v188_v40  ;;  %261 = vmatpush.msra.mxu0 %v153_v41  ;;  %v174_v1 = vld [vmem:[#allocation4 + $0x100] sm:$0xff]  ;;  %v175_v2 = vld [vmem:[#allocation4 + $0x108] sm:$0xff]  ;;  %v324_v3 = vld [vmem:[#allocation6 + $0xf8] sm:$0xff] }
  0x2a   :  { %221 = vmatpush.msra.mxu2 %v152_v39  ;;  %279 = vmatpush.msra.mxu1 %v189_v42  ;;  %v323_v4 = vld [vmem:[#allocation6 + $0xf0] sm:$0xff]  ;;  %v308_v5 = vld [vmem:[#allocation6 + $0x78] sm:$0xff]  ;;  %v322_v7 = vld [vmem:[#allocation6 + $0xe8] sm:$0xff] }
  0x2b   :  { %262 = vmatpush.msra.mxu0 %v151_v44  ;;  %240 = vmatpush.msra.mxu3 %v186_v48  ;;  %v307_v6 = vld [vmem:[#allocation6 + $0x70] sm:$0xff]  ;;  %v306_v8 = vld [vmem:[#allocation6 + $0x68] sm:$0xff]  ;;  %v321_v9 = vld [vmem:[#allocation6 + $0xe0] sm:$0xff] }
  0x2c   :  { %222 = vmatpush.msra.mxu2 %v150_v43  ;;  %280 = vmatpush.msra.mxu1 %v187_v50  ;;  %v305_v10 = vld [vmem:[#allocation6 + $0x60] sm:$0xff]  ;;  %v320_v11 = vld [vmem:[#allocation6 + $0xd8] sm:$0xff]  ;;  %v319_v13 = vld [vmem:[#allocation6 + $0xd0] sm:$0xff] }
  0x2d   :  { %263 = vmatpush.msra.mxu0 %v149_v46  ;;  %241 = vmatpush.msra.mxu3 %v184_v52  ;;  %v304_v12 = vld [vmem:[#allocation6 + $0x58] sm:$0xff]  ;;  %v303_v14 = vld [vmem:[#allocation6 + $0x50] sm:$0xff]  ;;  %v318_v15 = vld [vmem:[#allocation6 + $0xc8] sm:$0xff] }
  0x2e   :  { %223 = vmatpush.msra.mxu2 %v148_v45  ;;  %281 = vmatpush.msra.mxu1 %v185_v54  ;;  %v317_v16 = vld [vmem:[#allocation6 + $0xc0] sm:$0xff]  ;;  %v84_v17 = vld [vmem:[%s610_s5] sm:$0x3]  ;;  %v316_v18 = vld [vmem:[#allocation6 + $0xb8] sm:$0xff] }
  0x2f   :  { %264 = vmatpush.msra.mxu0 %v147_v49  ;;  %242 = vmatpush.msra.mxu3 %v182_v56  ;;  %v92_v19 = vperm.slane %v84_v17, 0  ;;  %v93_v23 = vperm.slane %v84_v17, 1  ;;  %v302_v27 = vld [vmem:[#allocation6 + $0x48] sm:$0xff]  ;;  %v315_v28 = vld [vmem:[#allocation6 + $0xb0] sm:$0xff]  ;;  %v301_v29 = vld [vmem:[#allocation6 + $0x40] sm:$0xff] }
  0x30   :  { %224 = vmatpush.msra.mxu2 %v146_v47  ;;  %282 = vmatpush.msra.mxu1 %v183_v58  ;;  %v314_v30 = vld [vmem:[#allocation6 + $0xa8] sm:$0xff]  ;;  %v300_v31 = vld [vmem:[#allocation6 + $0x38] sm:$0xff]  ;;  %v313_v32 = vld [vmem:[#allocation6 + $0xa0] sm:$0xff] }
  0x31   :  { %265 = vmatpush.msra.mxu0 %v145_v53  ;;  %243 = vmatpush.msra.mxu3 %v180_v59  ;;  %v299_v33 = vld [vmem:[#allocation6 + $0x30] sm:$0xff]  ;;  %v312_v34 = vld [vmem:[#allocation6 + $0x98] sm:$0xff]  ;;  %v298_v35 = vld [vmem:[#allocation6 + $0x28] sm:$0xff] }
  0x32   :  { %225 = vmatpush.msra.mxu2 %v144_v51  ;;  %283 = vmatpush.msra.mxu1 %v181_v60  ;;  %v311_v36 = vld [vmem:[#allocation6 + $0x90] sm:$0xff]  ;;  %v297_v37 = vld [vmem:[#allocation6 + $0x20] sm:$0xff]  ;;  %v310_v38 = vld [vmem:[#allocation6 + $0x88] sm:$0xff] }
  0x33   :  { %266 = vmatpush.msra.mxu0 %v143_v57  ;;  %244 = vmatpush.msra.mxu3 %v178_v61  ;;  %v296_v39 = vld [vmem:[#allocation6 + $0x18] sm:$0xff]  ;;  %v309_v40 = vld [vmem:[#allocation6 + $0x80] sm:$0xff]  ;;  %v295_v41 = vld [vmem:[#allocation6 + $0x10] sm:$0xff] }
  0x34   :  { %226 = vmatpush.msra.mxu2 %v142_v55  ;;  %284 = vmatpush.msra.mxu1 %v179_v62  ;;  %v294_v42 = vld [vmem:[#allocation6 + $0x8] sm:$0xff]  ;;  %v293_v43 = vld [vmem:[#allocation6] sm:$0xff]  ;;  %v384_v44 = vld [vmem:[#allocation7 + $0x78] sm:$0xff] }
  0x35   :  { %245 = vmatpush.msra.mxu3 %v176_v63  ;;  %v383_v45 = vld [vmem:[#allocation7 + $0x70] sm:$0xff]  ;;  %388 = vmatpush.msrb.mxu0 %v384_v44  ;;  %v382_v46 = vld [vmem:[#allocation7 + $0x68] sm:$0xff]  ;;  %v381_v47 = vld [vmem:[#allocation7 + $0x60] sm:$0xff] }
  0x36   :  { %285 = vmatpush.msra.mxu1 %v177_v0  ;;  %328 = vmatpush.msrb.mxu2 %v308_v5  ;;  %v380_v48 = vld [vmem:[#allocation7 + $0x58] sm:$0xff]  ;;  %v379_v49 = vld [vmem:[#allocation7 + $0x50] sm:$0xff]  ;;  %v378_v50 = vld [vmem:[#allocation7 + $0x48] sm:$0xff] }
  0x37   :  { %246 = vmatpush.msra.mxu3 %v174_v1  ;;  %389 = vmatpush.msrb.mxu0 %v383_v45  ;;  %v377_v51 = vld [vmem:[#allocation7 + $0x40] sm:$0xff]  ;;  %v85_v52 = vld [vmem:[%s610_s5 + $0x2] sm:$0x3]  ;;  %v376_v53 = vld [vmem:[#allocation7 + $0x38] sm:$0xff] }
  0x38   :  { %286 = vmatpush.msra.mxu1 %v175_v2  ;;  %329 = vmatpush.msrb.mxu2 %v307_v6  ;;  %v208_v54 = vperm.slane %v85_v52, 1  ;;  %v207_v58 = vperm.slane %v85_v52, 0  ;;  %v375_v2 = vld [vmem:[#allocation7 + $0x30] sm:$0xff]  ;;  %v372_v5 = vld [vmem:[#allocation7 + $0x18] sm:$0xff] }
  0x39   :  { %348 = vmatpush.msrb.mxu3 %v324_v3  ;;  %390 = vmatpush.msrb.mxu0 %v382_v46  ;;  %v374_v3 = vld [vmem:[#allocation7 + $0x28] sm:$0xff]  ;;  %v371_v6 = vld [vmem:[#allocation7 + $0x10] sm:$0xff] }
  0x3a   :  { %330 = vmatpush.msrb.mxu2 %v306_v8  ;;  %v369_v8 = vld [vmem:[#allocation7] sm:$0xff] }
  0x3b   :  { %349 = vmatpush.msrb.mxu3 %v323_v4  ;;  %391 = vmatpush.msrb.mxu0 %v381_v47  ;;  %v373_v4 = vld [vmem:[#allocation7 + $0x20] sm:$0xff] }
  0x3c   :  { %331 = vmatpush.msrb.mxu2 %v305_v10 }
  0x3d   :  { %350 = vmatpush.msrb.mxu3 %v322_v7  ;;  %392 = vmatpush.msrb.mxu0 %v380_v48  ;;  %v370_v7 = vld [vmem:[#allocation7 + $0x8] sm:$0xff] }
  0x3e   :  { %332 = vmatpush.msrb.mxu2 %v304_v12 }
  0x3f   :  { %351 = vmatpush.msrb.mxu3 %v321_v9  ;;  %393 = vmatpush.msrb.mxu0 %v379_v49  ;;  %v426_v9 = vld [vmem:[%s610_s5 + $0x4] ss:$0 sm:$0xff] }
  0x40   :  { %333 = vmatpush.msrb.mxu2 %v303_v14 }
  0x41   :  { %352 = vmatpush.msrb.mxu3 %v320_v11  ;;  %394 = vmatpush.msrb.mxu0 %v378_v50 }
  0x42   :  { %334 = vmatpush.msrb.mxu2 %v302_v27 }
  0x43   :  { %353 = vmatpush.msrb.mxu3 %v319_v13  ;;  %395 = vmatpush.msrb.mxu0 %v377_v51 }
  0x44   :  { %335 = vmatpush.msrb.mxu2 %v301_v29 }
  0x45   :  { %354 = vmatpush.msrb.mxu3 %v318_v15  ;;  %396 = vmatpush.msrb.mxu0 %v376_v53  ;;  %v427_v15 = vld [vmem:[%s610_s5 + $0x5] ss:$0 sm:$0xff] }
  0x46   :  { %336 = vmatpush.msrb.mxu2 %v300_v31 }
  0x47   :  { %355 = vmatpush.msrb.mxu3 %v317_v16  ;;  %397 = vmatpush.msrb.mxu0 %v375_v2 }
  0x48   :  { %337 = vmatpush.msrb.mxu2 %v299_v33 }
  0x49   :  { %356 = vmatpush.msrb.mxu3 %v316_v18  ;;  %398 = vmatpush.msrb.mxu0 %v374_v3 }
  0x4a   :  { %338 = vmatpush.msrb.mxu2 %v298_v35 }
  0x4b   :  { %357 = vmatpush.msrb.mxu3 %v315_v28  ;;  %399 = vmatpush.msrb.mxu0 %v373_v4 }
  0x4c   :  { %339 = vmatpush.msrb.mxu2 %v297_v37 }
  0x4d   :  { %358 = vmatpush.msrb.mxu3 %v314_v30  ;;  %400 = vmatpush.msrb.mxu0 %v372_v5 }
  0x4e   :  { %340 = vmatpush.msrb.mxu2 %v296_v39 }
  0x4f   :  { %359 = vmatpush.msrb.mxu3 %v313_v32  ;;  %401 = vmatpush.msrb.mxu0 %v371_v6 }
  0x50   :  { %341 = vmatpush.msrb.mxu2 %v295_v41 }
  0x51   :  { %360 = vmatpush.msrb.mxu3 %v312_v34  ;;  %402 = vmatpush.msrb.mxu0 %v370_v7 }
  0x52   :  { %342 = vmatpush.msrb.mxu2 %v294_v42 }
  0x53   :  { %361 = vmatpush.msrb.mxu3 %v311_v36  ;;  %403 = vmatpush.msrb.mxu0 %v369_v8 }
  0x54   :  { %343 = vmatpush.msrb.mxu2 %v293_v43 }
  0x55   :  { %362 = vmatpush.msrb.mxu3 %v310_v38 }
  0x57   :  { %363 = vmatpush.msrb.mxu3 %v309_v40 }
  0x92   :  { %v117_v20 = vpop.f32.mrf.mxu1 }
  0x93   :  { %v118_v21 = vadd.f32 %v117_v20, %v92_v19 }
  0x95   :  { %v140_v22 = vmax.f32 %v118_v21, 0.0 }
  0x97   :  { %227 = vmatmul.f32.vlgmr.msra.gmra.mxu2 %v140_v22  ;;  %267 = vmatmul.f32.vlgmr.msra.gmra.mxu0 %v140_v22 }
  0x9a   :  { %v137_v24 = vpop.f32.mrf.mxu1 }
  0x9b   :  { %v138_v25 = vadd.f32 %v137_v24, %v93_v23 }
  0x9d   :  { %v141_v26 = vmax.f32 %v138_v25, 0.0 }
  0x9f   :  { %247 = vmatmul.f32.vlgmr.msra.gmra.mxu3 %v141_v26  ;;  %287 = vmatmul.f32.vlgmr.msra.gmra.mxu1 %v141_v26 }
 0x114   :  { %v268_v55 = vpop.f32.mrf.mxu0 }
 0x115   :  { %v269_v56 = vadd.f32 %v268_v55, %v208_v54 }
 0x11a   :  { %v228_v60 = vpop.f32.mrf.mxu2 }
 0x11b   :  { %v229_v62 = vadd.f32 %v228_v60, %v207_v58 }
 0x11c   :  { %v288_v57 = vpop.f32.mrf.mxu1 }
 0x11d   :  { %v289_v59 = vadd.f32 %v288_v57, %v269_v56 }
 0x11f   :  { %v292_v61 = vmax.f32 %v289_v59, 0.0 }
 0x121   :  { %364 = vmatmul.f32.vlgmr.msrb.gmra.mxu3 %v292_v61 }
 0x122   :  { %v248_v63 = vpop.f32.mrf.mxu3 }
 0x123   :  { %v249_v0 = vadd.f32 %v248_v63, %v229_v62 }
 0x125   :  { %v291_v1 = vmax.f32 %v249_v0, 0.0 }
 0x127   :  { %344 = vmatmul.f32.vlgmr.msrb.gmra.mxu2 %v291_v1 }
 0x1a4   :  { %v365_v12 = vpop.f32.mrf.mxu3 }
 0x1aa   :  { %v345_v10 = vpop.f32.mrf.mxu2 }
 0x1ab   :  { %v346_v11 = vadd.f32 %v426_v9, %v345_v10 }
 0x1ad   :  { %v366_v13 = vadd.f32 %v365_v12, %v346_v11 }
 0x1af   :  { %v368_v14 = vmax.f32 %v366_v13, 0.0 }
 0x1b1   :  { %404 = vmatmul.f32.vlgmr.msrb.gmra.mxu0 %v368_v14 }
 0x22e   :  { %v405_v16 = vpop.f32.mrf.mxu0 }
 0x22f   :  { %v406_v17 = vadd.f32 %v427_v15, %v405_v16 }
 0x231   :  { %408 = vst [vmem:[%s611_s6] sm:$0xff] %v406_v17 }
 0x232   :  { %413 = vsyncpa [#allocation3], 1 }
 0x233   :  { %414 = vsyncpa [#allocation5], 1 }
 0x234   :  { %415 = vsyncpa [#allocation8], 1 }

</bundles_post_ra>
